<compile_context>
chip_gen: v6e
topology: v6e:2x2x1
jax: 0.10.0
libtpu: 0.0.40
codegen_flags: <defaults>
</compile_context>

<pallas_src>
import numpy as np
import jax
import jax.numpy as jnp
from jax.experimental import pallas as pl
from jax.experimental.pallas import tpu as pltpu


def _round_up(x, m):
    return ((x + m - 1) // m) * m


# -----------------------------------------------------------------------------
# Pallas kernel: fused classifier (softmax / sigmoid over class axis) + decode
# -----------------------------------------------------------------------------
def _make_postprocess_kernel(classifier, log_wh_scale):
    v_wh = float(log_wh_scale)

    def kernel(conf_ref, loc_ref, anchor_ref, score_ref, box_ref):
        # conf_ref block:   (1, C, TN)   classes on sublanes, anchors on lanes
        # loc_ref block:    (1, 4, TN)   rows = dx, dy, dw, dh
        # anchor_ref block: (6, TN)      rows = cx, cy, v_xy*w, v_xy*h, 0.5*w, 0.5*h
        conf = conf_ref[0]                                   # (C, TN)
        if conf.dtype != jnp.float32:
            conf = conf.astype(jnp.float32)

        if classifier == "softmax":
            m = jnp.max(conf, axis=0, keepdims=True)          # (1, TN) sublane reduce
            e = jnp.exp(conf - m)                             # (C, TN)
            denom = jnp.sum(e, axis=0, keepdims=True)         # (1, TN)
            score = e * pl.reciprocal(denom, approx=True)     # divide -> EUP slot
        else:  # 'sigmoid'
            score = pl.reciprocal(1.0 + jnp.exp(-conf), approx=True)

        score_ref[0] = score.astype(score_ref.dtype)          # unmasked lane-dense vst

        # SSD-style decode, fully row-wise (each operand is (1, TN), lane-dense).
        loc = loc_ref[0]                                      # (4, TN)
        if loc.dtype != jnp.float32:
            loc = loc.astype(jnp.float32)
        anc = anchor_ref[...]                                 # (6, TN)

        dx = loc[0:1, :]
        dy = loc[1:2, :]
        dw = loc[2:3, :]
        dh = loc[3:4, :]

        cx = anc[0:1, :] + dx * anc[2:3, :]                   # cx + dx*(v_xy*w)
        cy = anc[1:2, :] + dy * anc[3:4, :]                   # cy + dy*(v_xy*h)
        hw = anc[4:5, :] * jnp.exp(dw * v_wh)                 # 0.5*w * exp(dw*v_wh)
        hh = anc[5:6, :] * jnp.exp(dh * v_wh)                 # 0.5*h * exp(dh*v_wh)

        box_ref[0, 0:1, :] = (cx - hw).astype(box_ref.dtype)  # x1
        box_ref[0, 1:2, :] = (cy - hh).astype(box_ref.dtype)  # y1
        box_ref[0, 2:3, :] = (cx + hw).astype(box_ref.dtype)  # x2
        box_ref[0, 3:4, :] = (cy + hh).astype(box_ref.dtype)  # y2

    return kernel


def detect_postprocess_pallas(conf_cf, loc_cf, anchor_decode, *,
                              classifier="softmax", log_wh_scale=0.2, tn=2048):
    """Channel-first fused post-process.

    conf_cf:       (B, C, N)  class logits, anchors on the last (lane) axis.
    loc_cf:        (B, 4, N)  rows dx, dy, dw, dh.
    anchor_decode: (6, N)     rows cx, cy, v_xy*w, v_xy*h, 0.5*w, 0.5*h.
    Returns (score, box): score (B, C, N) f32, box (B, 4, N) f32 corner boxes.
    """
    B, C, N = conf_cf.shape
    assert loc_cf.shape == (B, 4, N)
    assert anchor_decode.shape == (6, N)

    # Tile size along the anchor/lane axis: multiple of 128, capped by request.
    tn = max(128, min(int(tn), _round_up(N, 128)))
    tn = (tn // 128) * 128
    n_pad = _round_up(N, tn)
    if n_pad != N:
        pad = n_pad - N
        conf_cf = jnp.pad(conf_cf, ((0, 0), (0, 0), (0, pad)))
        loc_cf = jnp.pad(loc_cf, ((0, 0), (0, 0), (0, pad)))
        anchor_decode = jnp.pad(anchor_decode, ((0, 0), (0, pad)))
    n_tiles = n_pad // tn

    kernel = _make_postprocess_kernel(classifier, log_wh_scale)

    score, box = pl.pallas_call(
        kernel,
        out_shape=(
            jax.ShapeDtypeStruct((B, C, n_pad), jnp.float32),
            jax.ShapeDtypeStruct((B, 4, n_pad), jnp.float32),
        ),
        grid_spec=pltpu.PrefetchScalarGridSpec(
            num_scalar_prefetch=0,
            grid=(B, n_tiles),
            in_specs=[
                pl.BlockSpec((1, C, tn), lambda b, n: (b, 0, n)),
                pl.BlockSpec((1, 4, tn), lambda b, n: (b, 0, n)),
                pl.BlockSpec((6, tn), lambda b, n: (0, n)),
            ],
            out_specs=[
                pl.BlockSpec((1, C, tn), lambda b, n: (b, 0, n)),
                pl.BlockSpec((1, 4, tn), lambda b, n: (b, 0, n)),
            ],
        ),
        compiler_params=pltpu.CompilerParams(
            dimension_semantics=("parallel", "parallel"),
            vmem_limit_bytes=32 * 1024 * 1024,
        ),
    )(conf_cf, loc_cf, anchor_decode)

    if n_pad != N:
        score = score[:, :, :N]
        box = box[:, :, :N]
    return score, box


# -----------------------------------------------------------------------------
# Anchor container: static decode table precomputed once on host
# -----------------------------------------------------------------------------
class Anchor:
    def __init__(self, boxes_cxcywh, variances=(0.1, 0.2)):
        self.boxes = jnp.asarray(boxes_cxcywh, dtype=jnp.float32)    # (N, 4)
        self.variances = (float(variances[0]), float(variances[1]))
        cx = self.boxes[:, 0]
        cy = self.boxes[:, 1]
        w = self.boxes[:, 2]
        h = self.boxes[:, 3]
        v_xy = self.variances[0]
        # Lane-dense (6, N) decode table: cx, cy, v_xy*w, v_xy*h, 0.5*w, 0.5*h
        self.decode_rows = jnp.stack(
            [cx, cy, v_xy * w, v_xy * h, 0.5 * w, 0.5 * h], axis=0)


# -----------------------------------------------------------------------------
# Host-side greedy NMS (data-dependent output lengths -> plain numpy/Python)
# -----------------------------------------------------------------------------
def _nms_numpy(boxes, scores, th_iou):
    """torchvision.ops.nms semantics: keep indices, highest score first."""
    order = np.argsort(-scores, kind="stable")
    keep = []
    while order.size > 0:
        i = int(order[0])
        keep.append(i)
        if order.size == 1:
            break
        rest = order[1:]
        xx1 = np.maximum(boxes[i, 0], boxes[rest, 0])
        yy1 = np.maximum(boxes[i, 1], boxes[rest, 1])
        xx2 = np.minimum(boxes[i, 2], boxes[rest, 2])
        yy2 = np.minimum(boxes[i, 3], boxes[rest, 3])
        iw = np.clip(xx2 - xx1, 0.0, None)
        ih = np.clip(yy2 - yy1, 0.0, None)
        inter = iw * ih
        area_i = (boxes[i, 2] - boxes[i, 0]) * (boxes[i, 3] - boxes[i, 1])
        area_r = (boxes[rest, 2] - boxes[rest, 0]) * (boxes[rest, 3] - boxes[rest, 1])
        iou = inter / (area_i + area_r - inter + 1e-12)
        order = rest[iou <= th_iou]
    return keep


class DetectPostProcess:
    """JAX/Pallas port of the PyTorch DetectPostProcess module.

    Note: the original __init__ sets self.softmax=None for classifier='softmax'
    and then calls it (a latent bug); we implement the clearly intended
    semantics: softmax over the class dim for 'softmax', sigmoid otherwise.
    """

    def __init__(self, anchor, th_conf=0.5, th_iou=0.5, classifier="softmax"):
        self.anchor = anchor
        self.th_conf = th_conf
        self.th_iou = th_iou
        self.classifier = classifier

    def __call__(self, conf, loc):
        # conf: (B, N, C), loc: (B, N, 4) -- the PyTorch module's layout.
        # Transpose to channel-first so anchors land on the TPU lane axis
        # (a real detector head would emit this layout natively).
        conf_cf = jnp.transpose(conf, (0, 2, 1))
        loc_cf = jnp.transpose(loc, (0, 2, 1))
        score_cf, box_cf = detect_postprocess_pallas(
            conf_cf, loc_cf, self.anchor.decode_rows,
            classifier=self.classifier,
            log_wh_scale=self.anchor.variances[1])
        jax.block_until_ready((score_cf, box_cf))
        # TODO(synk): add on-device th_conf compaction so only candidate
        # anchors are transferred; dense D2H + Python NMS dominates end-to-end.
        score = np.transpose(np.asarray(score_cf), (0, 2, 1))  # (B, N, C)
        box = np.transpose(np.asarray(box_cf), (0, 2, 1))      # (B, N, 4)
        return self.nms(score, box)

    def nms(self, score, box):
        num_cls = score.shape[2]
        batch_size = score.shape[0]
        cls_base = 0 if self.classifier == "sigmoid" else 1
        batches = []
        for b in range(batch_size):
            classes = []
            for i in range(cls_base, num_cls):
                mask = score[b][:, i] >= self.th_conf
                _box = box[b][mask]
                _score = score[b][mask, i]
                idx = _nms_numpy(_box, _score, self.th_iou)
                objs = np.concatenate((_box[idx], _score[idx][:, None]), axis=1)
                classes.append(objs.tolist())
            batches.append(classes)
        return batches


# -----------------------------------------------------------------------------
# Main
# -----------------------------------------------------------------------------
if __name__ == "__main__":
    B, N, C = 2, 512, 8  # batch, anchors, classes

    # Deterministic anchors: 16x32 grid of centers in [0,1], fixed 0.2x0.2 size.
    gy, gx = np.meshgrid(np.arange(16), np.arange(32), indexing="ij")
    cx = (gx.reshape(-1) + 0.5) / 32.0
    cy = (gy.reshape(-1) + 0.5) / 16.0
    w = np.full((N,), 0.2, dtype=np.float32)
    h = np.full((N,), 0.2, dtype=np.float32)
    anchor_boxes = np.stack([cx, cy, w, h], axis=1).astype(np.float32)  # (N, 4)

    anchor = Anchor(jnp.asarray(anchor_boxes), variances=(0.1, 0.2))
    module = DetectPostProcess(anchor, th_conf=0.5, th_iou=0.5,
                               classifier="softmax")

    key = jax.random.PRNGKey(0)
    k1, k2 = jax.random.split(key)
    conf = jax.random.normal(k1, (B, N, C), dtype=jnp.float32) * 3.0
    loc = jax.random.normal(k2, (B, N, 4), dtype=jnp.float32) * 0.5

    # Run the Pallas kernel once (channel-first layout, multi-tile grid).
    conf_cf = jnp.transpose(conf, (0, 2, 1))
    loc_cf = jnp.transpose(loc, (0, 2, 1))
    score_cf, box_cf = detect_postprocess_pallas(
        conf_cf, loc_cf, anchor.decode_rows, classifier="softmax",
        log_wh_scale=anchor.variances[1], tn=128)   # grid = (2, 4)
    jax.block_until_ready((score_cf, box_cf))

    # Cross-check the kernel against a pure-JAX reference (original layout).
    ref_score = jax.nn.softmax(conf, axis=2)
    a = anchor.boxes
    r_cx = a[:, 0] + loc[:, :, 0] * 0.1 * a[:, 2]
    r_cy = a[:, 1] + loc[:, :, 1] * 0.1 * a[:, 3]
    r_w = a[:, 2] * jnp.exp(loc[:, :, 2] * 0.2)
    r_h = a[:, 3] * jnp.exp(loc[:, :, 3] * 0.2)
    ref_box = jnp.stack(
        [r_cx - 0.5 * r_w, r_cy - 0.5 * r_h, r_cx + 0.5 * r_w, r_cy + 0.5 * r_h],
        axis=-1)

    # Score tolerance covers the EUP approximate reciprocal in the softmax.
    np.testing.assert_allclose(
        np.transpose(np.asarray(score_cf), (0, 2, 1)), np.asarray(ref_score),
        rtol=5e-3, atol=5e-3)
    np.testing.assert_allclose(
        np.transpose(np.asarray(box_cf), (0, 2, 1)), np.asarray(ref_box),
        rtol=1e-4, atol=1e-4)

    # Full module forward (kernel + host-side NMS), matching the PyTorch output
    # structure: batches -> classes -> list of [x1, y1, x2, y2, score].
    detections = module(conf, loc)
    assert len(detections) == B
    assert all(len(cls_lists) == C - 1 for cls_lists in detections)

    print("KERNEL_OK")
</pallas_src>

<mosaic_0001>
module attributes {stable_mosaic.version = 11 : i64} {
  func.func @kernel(%arg0: i32, %arg1: i32, %arg2: memref<1x8x128xf32, #tpu.memory_space<vmem>>, %arg3: memref<1x4x128xf32, #tpu.memory_space<vmem>>, %arg4: memref<6x128xf32, #tpu.memory_space<vmem>>, %arg5: memref<1x8x128xf32, #tpu.memory_space<vmem>>, %arg6: memref<1x4x128xf32, #tpu.memory_space<vmem>>) attributes {dimension_semantics = [#tpu.dimension_semantics<parallel>, #tpu.dimension_semantics<parallel>], iteration_bounds = array<i64: 2, 4>, scalar_prefetch = 0 : i64, scratch_operands = 0 : i64, tpu.core_type = #tpu.core_type<tc>, window_params = [{transform_indices = @transform_0, window_bounds = array<i64: 1, 8, 128>}, {transform_indices = @transform_1, window_bounds = array<i64: 1, 4, 128>}, {transform_indices = @transform_2, window_bounds = array<i64: 6, 128>}, {transform_indices = @transform_3, window_bounds = array<i64: 1, 8, 128>}, {transform_indices = @transform_4, window_bounds = array<i64: 1, 4, 128>}]} {
    %c0 = arith.constant 0 : index
    %c0_0 = arith.constant 0 : index
    %c0_1 = arith.constant 0 : index
    %0 = vector.load %arg2[%c0, %c0_0, %c0_1] : memref<1x8x128xf32, #tpu.memory_space<vmem>>, vector<1x8x128xf32>
    %1 = vector.shape_cast %0 : vector<1x8x128xf32> to vector<8x128xf32>
    %cst = arith.constant dense<0xFF800000> : vector<128xf32>
    %2 = vector.multi_reduction <maximumf>, %1, %cst [0] : vector<8x128xf32> to vector<128xf32>
    %3 = vector.shape_cast %2 : vector<128xf32> to vector<1x128xf32>
    %4 = vector.broadcast %3 : vector<1x128xf32> to vector<8x128xf32>
    %5 = arith.subf %1, %4 : vector<8x128xf32>
    %6 = math.exp %5 : vector<8x128xf32>
    %cst_2 = arith.constant dense<0.000000e+00> : vector<128xf32>
    %7 = vector.multi_reduction <add>, %6, %cst_2 [0] : vector<8x128xf32> to vector<128xf32>
    %8 = vector.shape_cast %7 : vector<128xf32> to vector<1x128xf32>
    %9 = tpu.reciprocal %8 {approx = true} : vector<1x128xf32> -> vector<1x128xf32>
    %10 = vector.broadcast %9 : vector<1x128xf32> to vector<8x128xf32>
    %11 = arith.mulf %6, %10 : vector<8x128xf32>
    %c0_3 = arith.constant 0 : index
    %c0_4 = arith.constant 0 : index
    %c0_5 = arith.constant 0 : index
    %12 = vector.load %arg5[%c0_3, %c0_4, %c0_5] : memref<1x8x128xf32, #tpu.memory_space<vmem>>, vector<1x8x128xf32>
    %13 = vector.shape_cast %12 : vector<1x8x128xf32> to vector<8x128xf32>
    %14 = vector.shape_cast %11 : vector<8x128xf32> to vector<1x8x128xf32>
    tpu.vector_store %arg5[%c0_3, %c0_4, %c0_5], %14 {strides = array<i32>} : memref<1x8x128xf32, #tpu.memory_space<vmem>>, vector<1x8x128xf32>,
    %c0_6 = arith.constant 0 : index
    %c0_7 = arith.constant 0 : index
    %c0_8 = arith.constant 0 : index
    %15 = vector.load %arg3[%c0_6, %c0_7, %c0_8] : memref<1x4x128xf32, #tpu.memory_space<vmem>>, vector<1x4x128xf32>
    %16 = vector.shape_cast %15 : vector<1x4x128xf32> to vector<4x128xf32>
    %c0_9 = arith.constant 0 : index
    %c0_10 = arith.constant 0 : index
    %17 = vector.load %arg4[%c0_9, %c0_10] : memref<6x128xf32, #tpu.memory_space<vmem>>, vector<6x128xf32>
    %18 = vector.extract_strided_slice %16 {offsets = [0, 0], sizes = [1, 128], strides = [1, 1]} : vector<4x128xf32> to vector<1x128xf32>
    %19 = vector.extract_strided_slice %16 {offsets = [1, 0], sizes = [1, 128], strides = [1, 1]} : vector<4x128xf32> to vector<1x128xf32>
    %20 = vector.extract_strided_slice %16 {offsets = [2, 0], sizes = [1, 128], strides = [1, 1]} : vector<4x128xf32> to vector<1x128xf32>
    %21 = vector.extract_strided_slice %16 {offsets = [3, 0], sizes = [1, 128], strides = [1, 1]} : vector<4x128xf32> to vector<1x128xf32>
    %22 = vector.extract_strided_slice %17 {offsets = [0, 0], sizes = [1, 128], strides = [1, 1]} : vector<6x128xf32> to vector<1x128xf32>
    %23 = vector.extract_strided_slice %17 {offsets = [2, 0], sizes = [1, 128], strides = [1, 1]} : vector<6x128xf32> to vector<1x128xf32>
    %24 = arith.mulf %18, %23 : vector<1x128xf32>
    %25 = arith.addf %22, %24 : vector<1x128xf32>
    %26 = vector.extract_strided_slice %17 {offsets = [1, 0], sizes = [1, 128], strides = [1, 1]} : vector<6x128xf32> to vector<1x128xf32>
    %27 = vector.extract_strided_slice %17 {offsets = [3, 0], sizes = [1, 128], strides = [1, 1]} : vector<6x128xf32> to vector<1x128xf32>
    %28 = arith.mulf %19, %27 : vector<1x128xf32>
    %29 = arith.addf %26, %28 : vector<1x128xf32>
    %30 = vector.extract_strided_slice %17 {offsets = [4, 0], sizes = [1, 128], strides = [1, 1]} : vector<6x128xf32> to vector<1x128xf32>
    %cst_11 = arith.constant 2.000000e-01 : f32
    %31 = vector.broadcast %cst_11 : f32 to vector<1x128xf32>
    %32 = arith.mulf %20, %31 : vector<1x128xf32>
    %33 = math.exp %32 : vector<1x128xf32>
    %34 = arith.mulf %30, %33 : vector<1x128xf32>
    %35 = vector.extract_strided_slice %17 {offsets = [5, 0], sizes = [1, 128], strides = [1, 1]} : vector<6x128xf32> to vector<1x128xf32>
    %cst_12 = arith.constant 2.000000e-01 : f32
    %36 = vector.broadcast %cst_12 : f32 to vector<1x128xf32>
    %37 = arith.mulf %21, %36 : vector<1x128xf32>
    %38 = math.exp %37 : vector<1x128xf32>
    %39 = arith.mulf %35, %38 : vector<1x128xf32>
    %40 = arith.subf %25, %34 : vector<1x128xf32>
    %c0_13 = arith.constant 0 : index
    %c0_14 = arith.constant 0 : index
    %c0_15 = arith.constant 0 : index
    %41 = vector.load %arg6[%c0_13, %c0_14, %c0_15] : memref<1x4x128xf32, #tpu.memory_space<vmem>>, vector<1x1x128xf32>
    %42 = vector.shape_cast %41 : vector<1x1x128xf32> to vector<1x128xf32>
    %43 = vector.shape_cast %40 : vector<1x128xf32> to vector<1x1x128xf32>
    tpu.vector_store %arg6[%c0_13, %c0_14, %c0_15], %43 {strides = array<i32>} : memref<1x4x128xf32, #tpu.memory_space<vmem>>, vector<1x1x128xf32>,
    %44 = arith.subf %29, %39 : vector<1x128xf32>
    %c0_16 = arith.constant 0 : index
    %c1 = arith.constant 1 : index
    %c0_17 = arith.constant 0 : index
    %45 = vector.load %arg6[%c0_16, %c1, %c0_17] : memref<1x4x128xf32, #tpu.memory_space<vmem>>, vector<1x1x128xf32>
    %46 = vector.shape_cast %45 : vector<1x1x128xf32> to vector<1x128xf32>
    %47 = vector.shape_cast %44 : vector<1x128xf32> to vector<1x1x128xf32>
    tpu.vector_store %arg6[%c0_16, %c1, %c0_17], %47 {strides = array<i32>} : memref<1x4x128xf32, #tpu.memory_space<vmem>>, vector<1x1x128xf32>,
    %48 = arith.addf %25, %34 : vector<1x128xf32>
    %c0_18 = arith.constant 0 : index
    %c2 = arith.constant 2 : index
    %c0_19 = arith.constant 0 : index
    %49 = vector.load %arg6[%c0_18, %c2, %c0_19] : memref<1x4x128xf32, #tpu.memory_space<vmem>>, vector<1x1x128xf32>
    %50 = vector.shape_cast %49 : vector<1x1x128xf32> to vector<1x128xf32>
    %51 = vector.shape_cast %48 : vector<1x128xf32> to vector<1x1x128xf32>
    tpu.vector_store %arg6[%c0_18, %c2, %c0_19], %51 {strides = array<i32>} : memref<1x4x128xf32, #tpu.memory_space<vmem>>, vector<1x1x128xf32>,
    %52 = arith.addf %29, %39 : vector<1x128xf32>
    %c0_20 = arith.constant 0 : index
    %c3 = arith.constant 3 : index
    %c0_21 = arith.constant 0 : index
    %53 = vector.load %arg6[%c0_20, %c3, %c0_21] : memref<1x4x128xf32, #tpu.memory_space<vmem>>, vector<1x1x128xf32>
    %54 = vector.shape_cast %53 : vector<1x1x128xf32> to vector<1x128xf32>
    %55 = vector.shape_cast %52 : vector<1x128xf32> to vector<1x1x128xf32>
    tpu.vector_store %arg6[%c0_20, %c3, %c0_21], %55 {strides = array<i32>} : memref<1x4x128xf32, #tpu.memory_space<vmem>>, vector<1x1x128xf32>,
    return
  }
  func.func @transform_0(%arg0: i32, %arg1: i32) -> (i32, i32, i32) {
    %c0_i32 = arith.constant 0 : i32
    %c0_i32_0 = arith.constant 0 : i32
    return %arg0, %c0_i32, %arg1 : i32, i32, i32
  }
  func.func @transform_1(%arg0: i32, %arg1: i32) -> (i32, i32, i32) {
    %c0_i32 = arith.constant 0 : i32
    %c0_i32_0 = arith.constant 0 : i32
    return %arg0, %c0_i32, %arg1 : i32, i32, i32
  }
  func.func @transform_2(%arg0: i32, %arg1: i32) -> (i32, i32) {
    %c0_i32 = arith.constant 0 : i32
    %c0_i32_0 = arith.constant 0 : i32
    return %c0_i32, %arg1 : i32, i32
  }
  func.func @transform_3(%arg0: i32, %arg1: i32) -> (i32, i32, i32) {
    %c0_i32 = arith.constant 0 : i32
    %c0_i32_0 = arith.constant 0 : i32
    return %arg0, %c0_i32, %arg1 : i32, i32, i32
  }
  func.func @transform_4(%arg0: i32, %arg1: i32) -> (i32, i32, i32) {
    %c0_i32 = arith.constant 0 : i32
    %c0_i32_0 = arith.constant 0 : i32
    return %arg0, %c0_i32, %arg1 : i32, i32, i32
  }
}

</mosaic_0001>

<bundles_post_ra>
// kernel: tpu_custom_call.1
= control target key start
LH: loop header
LB: loop body
LE: loop exit
PB: predicated region body
PF: predicated region fallthrough
CT: control target
= control target key end

     0   :  { %s1297_s0 = inlined_call_operand.hbm [shape: f32[2,8,512], index: 0, kind: input, shape index: {}]   ;;  %s1298_s1 = inlined_call_operand.hbm [shape: f32[2,4,512], index: 1, kind: input, shape index: {}]   ;;  %s1299_s2 = inlined_call_operand.hbm [shape: f32[6,512], index: 2, kind: input, shape index: {}]   ;;  %s1300_s3 = inlined_call_operand.hbm [shape: f32[2,8,512], index: 3, kind: output, shape index: {0}]   ;;  %s1301_s4 = inlined_call_operand.hbm [shape: f32[2,4,512], index: 4, kind: output, shape index: {1}]  }
   0x1   :  { %1313 = sst [smem:[#allocation23_spill]] %s1298_s1 }
   0x2   :  { %1314 = sst [smem:[#allocation24_spill]] %s1300_s3 }
   0x3   :  { %1315 = sst [smem:[#allocation25_spill]] %s1301_s4 }
   0x4   :  { %10 = vsyncpa [#allocation3], 0 }
   0x5   :  { %12 = vsyncpa [#allocation3 + $0x1], 0 }
   0x6   :  { %13 = vsyncpa [#allocation6], 0 }
   0x7   :  { %15 = vsyncpa [#allocation6 + $0x1], 0 }
   0x8   :  { %16 = vsyncpa [#allocation4], 0 }
   0x9   :  { %18 = vsyncpa [#allocation4 + $0x1], 0 }
   0xa   :  { %19 = vsyncpa [#allocation10], 0 }
   0xb   :  { %21 = vsyncpa [#allocation10 + $0x1], 0  ;;  %s984_s15 = smov 0   ;;  %s986_s16 = smov 0  }
   0xc   :  { %s988_s17 = smov 0   ;;  %s990_s18 = smov 0  }
   0xd   :  { %s992_s19 = smov 0   ;;  %s994_s20 = smov 0  }
   0xe   :  { %s996_s21 = smov 0   ;;  %s998_s22 = smov 0  }
   0xf   :  { %s1000_s23 = smov 0   ;;  %s1002_s24 = smov 0  }
  0x10   :  { %s1004_s25 = smov 0  }
  0x11 LB: > { %1316 = sst [smem:[#allocation16_spill]] %s924_s18  ;;  %s1040_s26 = sadd.s32 4294967295, %s952_s25   ;;  %s952_s25 = sphi %s1004_s25, %s27_s25   ;;  %s948_s24 = sphi %s1002_s24, %s1345_s24   ;;  %s944_s23 = sphi %s1000_s23, %s1352_s23   ;;  %s940_s22 = sphi %s998_s22, %s1343_s22   ;;  %s936_s21 = sphi %s996_s21, %s1351_s21   ;;  %s932_s20 = sphi %s994_s20, %s1342_s20   ;;  %s928_s19 = sphi %s992_s19, %s1350_s19   ;;  %s924_s18 = sphi %s990_s18, %s1349_s18   ;;  %s920_s17 = sphi %s988_s17, %s1348_s17   ;;  %s916_s16 = sphi %s986_s16, %s1347_s16   ;;  %s912_s15 = sphi %s984_s15, %s1346_s15  }
  0x12   : > { %1317 = sst [smem:[#allocation17_spill]] %s932_s20  ;;  %s562_s27 = sadd.s32 4294967294, %s952_s25  }
  0x13   : > { %1318 = sst [smem:[#allocation18_spill]] %s948_s24  ;;  %s36_s28 = sadd.s32 1, %s944_s23 }
  0x14   : > { %s39_s29 = sadd.s32 1, %s948_s24  ;;  %p37_p0 = scmp.ge.s32.totalorder %s36_s28, 4 }
  0x15   : > { %s48_s30 = sadd.s32 1, %s932_s20  ;;  %p55_p1 = scmp.ne.s32.totalorder %s932_s20, %s928_s19 }
  0x16   : > { %p1312_p2 = scmp.eq.s32.totalorder %s952_s25, 0  ;;  %s1354_s28 = smov (%p37_p0, %s36_s28), 0 }
  0x17   : > { %1319 = sst [smem:[#allocation19_spill]] %s1354_s28  ;;  %s1356_s29 = smov (!%p37_p0, %s39_s29), %s948_s24 }
  0x18   : > { %s1054_s5 = ssub.s32 %s944_s23, %s1354_s28  ;;  %p1061_p3 = por %p1312_p2, %p55_p1 }
  0x19   : > { %p41_p4 = scmp.ge.s32.totalorder %s1356_s29, 2  ;;  %p61_p5 = scmp.ne.s32.totalorder %s928_s19, %s924_s18 }
  0x1a   : > { %p1311_p6 = scmp.eq.s32.totalorder %s1040_s26, 0  ;;  %p100_p7 = scmp.eq.s32.totalorder %s1054_s5, 0 }
  0x1b   : > { %s1358_s29 = smov (%p41_p4, %s1356_s29), 0  ;;  %p141_p9 = scmp.eq.s32.totalorder %s1040_s26, 7 }
  0x1c   : > { %1321 = sst [smem:[#allocation20_spill]] %s1358_s29  ;;  %p1073_p8 = por %p1311_p6, %p61_p5 }
  0x1d   : > { %s43_s8 = ssub.s32 %s948_s24, %s1358_s29  ;;  %p147_p10 = scmp.eq.s32.totalorder %s562_s27, 7 }
  0x1e   : > { %s45_s9 = sor.u32 %s1054_s5, %s43_s8  ;;  %p1084_p11 = por %p141_p9, %p55_p1 }
  0x1f   : > { %p46_p12 = scmp.eq.s32.totalorder %s45_s9, 0  ;;  %p1088_p13 = por %p147_p10, %p61_p5 }
  0x20   : > { %p1310_p0 = scmp.lt.s32.totalorder %s952_s25, 8  ;;  %s1097_s13 = sand.u32 1, %s932_s20  }
  0x21   : > { %s1324_s11 = scalar_select %p1088_p13, 1, 0 }
  0x22   : > { %s1094_s12 = scalar_select %p46_p12, %s932_s20, %s48_s30  }
  0x23   : > { %1325 = sst [smem:[#allocation21_spill]] %s1324_s11  ;;  %s566_s14 = sshll.u32 %s948_s24, 2 }
  0x24   : > { %1326 = sst [smem:[#allocation22_spill]] %s1094_s12  ;;  %s1101_s27 = sadd.s32 %s944_s23, %s566_s14 }
  0x25   : > { %p1107_p1 = pnand %p1310_p0, %p1061_p3  ;;  %s215_s9 = sand.u32 1, %s952_s25  }
  0x26   : > { %s568_s29 = sshll.u32 %s1097_s13, 2  ;;  %s570_s28 = sshll.u32 %s1101_s27, 6 }
  0x27   : > { %s1328_s1 = sld [smem:[#allocation23_spill]]  ;;  %s219_s11 = scalar_lea.vmem [#allocation5], %s568_s29 }
  0x28   : > { %s228_s24 = sshll.u32 %s219_s11, 4  ;;  %p573_p4 = scmp.ge.s32.totalorder %s952_s25, 1  ;;  %s229_s24 = int_to_ptr.vmem [resolvable:$true] %s228_s24 }
  0x29   : > { %s1118_s6 = scalar_lea.sflag [#allocation6], %s215_s9  ;;  %p712_p3 = pneg %p1107_p1 }
  0x2a   : > { %s723_s14 = scalar_lea.vmem %s229_s24, 64  ;;  %s954_s18 = smov [#allocation5]  }
  0x2b   : > { %p724_p5 = scmp.ne.s32.totalorder %s229_s24, %s723_s14  ;;  %s728_s3 = sshll.u32 %s954_s18, 4  ;;  %s729_s3 = int_to_ptr.vmem [resolvable:$false] %s728_s3 }
  0x2c   : > { %s730_s4 = scalar_lea.vmem %s729_s3, 128  ;;  %p731_p12 = scmp.lt.s32.totalorder %s229_s24, %s729_s3 }
  0x2d   : > { %s226_s20 = scalar_lea.hbm %s1328_s1, %s570_s28  ;;  %p726_p9 = pnand %p724_p5, %p712_p3 }
  0x2e   : > { %p732_p0 = scmp.lt.s32.totalorder %s730_s4, %s723_s14 }
  0x2f   : > { %p727_p10 = pneg %p726_p9 }
  0x30   : > { %p733_p6 = por %p732_p0, %p731_p12 }
  0x32   : > { %p734_p2 = pnand %p733_p6, %p727_p10 }
  0x34   : > { %737 = shalt.err (!%p734_p2)
}
  0x35   : > { %603 = dma.hbm_to_vmem [thread:$0]  (!%p1107_p1), %s226_s20, 64, %s229_s24, %s1118_s6  }
  0x36   : > { %p251_p5 = scmp.lt.s32.totalorder %s952_s25, 9  ;;  %s565_s3 = sshll.u32 %s1097_s13, 3 }
  0x37   : > { %s567_s4 = sshll.u32 %s1101_s27, 7  ;;  %s199_s12 = scalar_lea.vmem [#allocation2], %s565_s3 }
  0x38   : > { %p1131_p9 = pnand %p573_p4, %p251_p5  ;;  %s206_s11 = scalar_lea.hbm %s1297_s0, %s567_s4 }
  0x39   : > { %s208_s9 = sshll.u32 %s199_s12, 4  ;;  %s196_s30 = scalar_lea.sflag [#allocation3], %s1097_s13  ;;  %s209_s9 = int_to_ptr.vmem [resolvable:$true] %s208_s9 }
  0x3a   : > { %s751_s14 = scalar_lea.vmem %s209_s9, 128  ;;  %s955_s20 = smov [#allocation2]  }
  0x3b   : > { %p752_p2 = scmp.ne.s32.totalorder %s209_s9, %s751_s14  ;;  %s756_s24 = sshll.u32 %s955_s20, 4  ;;  %s757_s24 = int_to_ptr.vmem [resolvable:$false] %s756_s24 }
  0x3c   : > { %s758_s1 = scalar_lea.vmem %s757_s24, 256  ;;  %p759_p4 = scmp.lt.s32.totalorder %s209_s9, %s757_s24 }
  0x3d   : > { %p754_p6 = pnand %p752_p2, %p712_p3  ;;  %p760_p10 = scmp.lt.s32.totalorder %s758_s1, %s751_s14 }
  0x3f   : > { %p755_p0 = pneg %p754_p6  ;;  %p761_p12 = por %p760_p10, %p759_p4 }
  0x41   : > { %p762_p5 = pnand %p761_p12, %p755_p0 }
  0x43   : > { %765 = shalt.err (!%p762_p5)
}
  0x44   : > { %600 = dma.hbm_to_vmem [thread:$0]  (!%p1107_p1), %s206_s11, 128, %s209_s9, %s196_s30  }
  0x45   : > { %s102_s13 = sadd.s32 1, %s920_s17  ;;  %p109_p3 = scmp.ne.s32.totalorder %s920_s17, %s916_s16 }
  0x46   : > { %s1150_s1 = scalar_select %p100_p7, %s920_s17, %s102_s13  }
  0x47   : > { %p115_p2 = scmp.ne.s32.totalorder %s916_s16, %s912_s15  ;;  %s237_s27 = sand.u32 1, %s920_s17  }
  0x48   : > { %s572_s8 = sshll.u32 %s944_s23, 7  ;;  %p1330_p6 = scmp.eq.s32.totalorder %s952_s25, 0 }
  0x49   : > { %p1331_p4 = scmp.eq.s32.totalorder %s1040_s26, 0  ;;  %s571_s4 = sshll.u32 %s237_s27, 3 }
  0x4a   : > { %p111_p0 = por %p109_p3, %p1330_p6  ;;  %s244_s11 = scalar_lea.hbm %s1299_s2, %s572_s8 }
  0x4b   : > { %p1162_p10 = por %p115_p2, %p1331_p4  ;;  %p1333_p1 = scmp.lt.s32.totalorder %s952_s25, 8 }
  0x4c   : > { %s239_s15 = scalar_lea.vmem [#allocation7], %s571_s4  ;;  %s956_s30 = smov [#allocation7]  }
  0x4d   : > { %p1171_p12 = pnand %p1333_p1, %p111_p0  ;;  %s246_s12 = sshll.u32 %s239_s15, 4  ;;  %s247_s12 = int_to_ptr.vmem [resolvable:$true] %s246_s12 }
  0x4e   : > { %s779_s9 = scalar_lea.vmem %s247_s12, 128  ;;  %s784_s14 = sshll.u32 %s956_s30, 4  ;;  %s785_s14 = int_to_ptr.vmem [resolvable:$false] %s784_s14 }
  0x4f   : > { %p768_p7 = pneg %p1171_p12  ;;  %p780_p5 = scmp.ne.s32.totalorder %s247_s12, %s779_s9 }
  0x50   : > { %s786_s20 = scalar_lea.vmem %s785_s14, 256  ;;  %p787_p6 = scmp.lt.s32.totalorder %s247_s12, %s785_s14 }
  0x51   : > { %p782_p3 = pnand %p780_p5, %p768_p7  ;;  %p788_p4 = scmp.lt.s32.totalorder %s786_s20, %s779_s9 }
  0x53   : > { %p783_p2 = pneg %p782_p3  ;;  %p789_p0 = por %p788_p4, %p787_p6 }
  0x55   : > { %p790_p1 = pnand %p789_p0, %p783_p2 }
  0x57   : > { %793 = shalt.err (!%p790_p1)
}
  0x58   : > { %606 = dma.hbm_to_vmem [thread:$0]  (!%p1171_p12), %s244_s11, 128, %s247_s12, %s1118_s6  }
  0x59   : > { %255 = sbr.rel (%p1131_p9) target bundleno = 183 (0xb7), region = 32  ;;  %s1183_s24 = sand.u32 (!%p1131_p9), 1, %s928_s19  }
  0x5a   : > { %s574_s13 = sshll.u32 (!%p1131_p9), %s1183_s24, 3  ;;  %s258_s27 = scalar_lea.sflag (!%p1131_p9), [#allocation3], %s1183_s24 }
  0x5b   : > { %s261_s8 = scalar_lea.vmem (!%p1131_p9), [#allocation2], %s574_s13 }
  0x5e   : > { %891 = dma.done.wait (%p1073_p8), %s258_s27, 128  }
  0x5f   : > { %893 = vsyncadd (%p1073_p8), %s258_s27, 4294967168  ;;  %s266_s6 = sand.u32 1, %s1040_s26   ;;  %s575_s18 = sshll.u32 %s1183_s24, 2 }
  0x60   : > { %s267_s4 = scalar_lea.sflag [#allocation6], %s266_s6  ;;  %s270_s28 = scalar_lea.vmem [#allocation5], %s575_s18 }
  0x61   : > { %895 = dma.done.wait (%p1073_p8), %s267_s4, 64  }
  0x62   : > { %897 = vsyncadd (%p1073_p8), %s267_s4, 4294967232  ;;  %s277_s29 = sand.u32 1, %s916_s16  }
  0x63   : > { %s576_s11 = sshll.u32 %s277_s29, 3 }
  0x64   : > { %s279_s5 = scalar_lea.vmem [#allocation7], %s576_s11 }
  0x65   : > { %899 = dma.done.wait (%p1162_p10), %s267_s4, 128  }
  0x66   : > { %901 = vsyncadd (%p1162_p10), %s267_s4, 4294967168  ;;  %v319_v0 = vld [vmem:[%s261_s8] sm:$0xff]  ;;  %v338_v1 = vld [vmem:[%s270_s28] sm:$0xf]  ;;  %s581_s26 = sshll.u32 %s940_s22, 2  ;;  %s318_s3 = scalar_lea.vmem [#allocation9], %s575_s18 }
  0x67   : > { %v320_v2 = vrot.slane %v319_v0, 4  ;;  %v345_v3 = vmul.f32 0.2, %v338_v1  ;;  %v339_v9 = vld [vmem:[%s279_s5] sm:$0x3f]  ;;  %s1208_s7 = sadd.s32 %s936_s21, %s581_s26  ;;  %s397_s15 = sshll.u32 %s318_s3, 4  ;;  %s1213_s15 = int_to_ptr.vmem [resolvable:$true] %s397_s15 }
  0x68   : > { %v341_v12 = vrot.slane %v339_v9, 2  ;;  %s584_s12 = sshll.u32 %s1208_s7, 6  ;;  %s1335_s21 = sld [smem:[#allocation25_spill]] }
  0x69   : > { %v321_v4 = vmax.f32 %v319_v0, %v320_v2  ;;  %v346_v5 = vmul.f32 1.442695, %v345_v3  ;;  %s367_s20 = scalar_lea.sflag [#allocation10], %s1183_s24  ;;  %s794_s27 = scalar_lea.vmem %s1213_s15, 64 }
  0x6a   : > { %v343_v14 = vmul.f32 %v341_v12, %v338_v1  ;;  %p795_p8 = scmp.ne.s32.totalorder %s1213_s15, %s794_s27  ;;  %s957_s8 = smov [#allocation9]  }
  0x6b   : > { %v322_v6 = vrot.slane %v321_v4, 2  ;;  %704 = vpow2.f32 %v346_v5  ;;  %s798_s6 = sshll.u32 %s957_s8, 4  ;;  %s799_s6 = int_to_ptr.vmem [resolvable:$false] %s798_s6 }
  0x6c   : > { %v344_v17 = vadd.f32 %v343_v14, %v339_v9  ;;  %p796_p9 = pnand %p795_p8, %p1084_p11  ;;  %s800_s18 = scalar_lea.vmem %s799_s6, 128 }
  0x6d   : > { %v323_v7 = vmax.f32 %v321_v4, %v322_v6  ;;  %p801_p12 = scmp.lt.s32.totalorder %s1213_s15, %s799_s6  ;;  %p802_p7 = scmp.lt.s32.totalorder %s800_s18, %s794_s27 }
  0x6e   : > { %s1336_s30 = smov %s1335_s21  ;;  %s395_s14 = scalar_lea.hbm %s1335_s21, %s584_s12 }
  0x6f   : > { %v324_v8 = vrot.slane %v323_v7, 1  ;;  %p797_p10 = pneg %p796_p9  ;;  %p803_p5 = por %p802_p7, %p801_p12 }
  0x71   : > { %v325_v10 = vmax.f32 %v323_v7, %v324_v8  ;;  %p804_p3 = pnand %p803_p5, %p797_p10 }
  0x73   : > { %v326_v11 = vsub.f32 %v319_v0, %v325_v10 }
  0x75   : > { %v327_v13 = vmul.f32 1.442695, %v326_v11 }
  0x77   : > { %706 = vpow2.f32 %v327_v13 }
  0x78   : > { %v705_v15 = vpop.eup %704 }
  0x79   : > { %v349_v16 = vrot.slane %v705_v15, 6 }
  0x7b   : > { %v351_v18 = vmul.f32 %v349_v16, %v339_v9 }
  0x7d   : > { %v353_v19 = vrot.slane %v351_v18, 4 }
  0x7f   : > { %v355_v20 = vsub.f32 %v344_v17, %v353_v19  ;;  %v358_v21 = vadd.f32 %v353_v19, %v344_v17 }
  0x81   : > { %356 = vst [vmem:[%s318_s3] sm:$0x3] %v355_v20   ;;  %359 = vst [vmem:[%s318_s3 + $0x2] sm:$0x3] %v358_v21  }
  0x82   : > { %807 = shalt.err (!%p804_p3)
}
  0x83   : > { %s808_s4 = scalar_lea.hbm %s395_s14, 64  ;;  %s812_s11 = scalar_lea.hbm %s1336_s30, 512 }
  0x84   : > { %p809_p2 = scmp.ne.s32.totalorder %s395_s14, %s808_s4  ;;  %p813_p0 = scmp.lt.s32.totalorder %s395_s14, %s1336_s30 }
  0x85   : > { %p814_p1 = scmp.lt.s32.totalorder %s812_s11, %s808_s4 }
  0x86   : > { %p810_p6 = pnand %p809_p2, %p1084_p11 }
  0x87   : > { %p815_p8 = por %p814_p1, %p813_p0 }
  0x88   : > { %p811_p4 = pneg %p810_p6 }
  0x8a   : > { %p816_p9 = pnand %p815_p8, %p811_p4 }
  0x8c   : > { %819 = shalt.err (!%p816_p9)
}
  0x8d   : > { %594 = dma.vmem_to_hbm [thread:$0]  (%p1084_p11), %s1213_s15, 64, %s395_s14, %s367_s20   ;;  %v707_v22 = vpop.eup %706 }
  0x8e   : > { %v329_v23 = vrot.slane %v707_v22, 4  ;;  %s311_s3 = scalar_lea.vmem [#allocation8], %s574_s13  ;;  %s582_s22 = sshll.u32 %s1208_s7, 7 }
  0x8f   : > { %s382_s12 = sshll.u32 %s311_s3, 4  ;;  %s1337_s21 = sld [smem:[#allocation24_spill]]  ;;  %s1238_s12 = int_to_ptr.vmem [resolvable:$true] %s382_s12 }
  0x90   : > { %v330_v24 = vadd.f32 %v707_v22, %v329_v23  ;;  %s362_s27 = scalar_lea.sflag [#allocation4], %s1183_s24  ;;  %s820_s8 = scalar_lea.vmem %s1238_s12, 128 }
  0x91   : > { %p821_p10 = scmp.ne.s32.totalorder %s1238_s12, %s820_s8  ;;  %s958_s13 = smov [#allocation8]  }
  0x92   : > { %v331_v25 = vrot.slane %v330_v24, 2  ;;  %s824_s7 = sshll.u32 %s958_s13, 4  ;;  %s825_s7 = int_to_ptr.vmem [resolvable:$false] %s824_s7 }
  0x93   : > { %p822_p12 = pnand %p821_p10, %p1084_p11  ;;  %s826_s6 = scalar_lea.vmem %s825_s7, 256 }
  0x94   : > { %v332_v26 = vadd.f32 %v331_v25, %v330_v24  ;;  %p827_p5 = scmp.lt.s32.totalorder %s1238_s12, %s825_s7  ;;  %p828_p3 = scmp.lt.s32.totalorder %s826_s6, %s820_s8 }
  0x95   : > { %s1338_s14 = smov %s1337_s21  ;;  %s380_s20 = scalar_lea.hbm %s1337_s21, %s582_s22 }
  0x96   : > { %v333_v27 = vrot.slane %v332_v26, 1  ;;  %p823_p7 = pneg %p822_p12  ;;  %p829_p2 = por %p828_p3, %p827_p5 }
  0x98   : > { %v334_v28 = vadd.f32 %v333_v27, %v332_v26  ;;  %p830_p6 = pnand %p829_p2, %p823_p7 }
  0x9a   : > { %708 = vrcp.f32 %v334_v28 }
  0xa7   : > { %v709_v29 = vpop.eup %708 }
  0xa8   : > { %v336_v30 = vmul.f32 %v709_v29, %v707_v22 }
  0xaa   : > { %337 = vst [vmem:[%s311_s3] sm:$0xff] %v336_v30 }
  0xab   : > { %833 = shalt.err (!%p830_p6)
}
  0xac   : > { %s834_s18 = scalar_lea.hbm %s380_s20, 128  ;;  %s838_s28 = scalar_lea.hbm %s1338_s14, 1024 }
  0xad   : > { %p835_p4 = scmp.ne.s32.totalorder %s380_s20, %s834_s18  ;;  %p839_p8 = scmp.lt.s32.totalorder %s380_s20, %s1338_s14 }
  0xae   : > { %p840_p9 = scmp.lt.s32.totalorder %s838_s28, %s834_s18 }
  0xaf   : > { %p836_p0 = pnand %p835_p4, %p1084_p11 }
  0xb0   : > { %p841_p10 = por %p840_p9, %p839_p8 }
  0xb1   : > { %p837_p1 = pneg %p836_p0 }
  0xb3   : > { %p842_p12 = pnand %p841_p10, %p837_p1 }
  0xb5   : > { %845 = shalt.err (!%p842_p12)
}
  0xb6   : > { %593 = dma.vmem_to_hbm [thread:$0]  (%p1084_p11), %s1238_s12, 128, %s380_s20, %s362_s27  }
  0xb7 PF: > { %s1339_s5 = sld [smem:[#allocation16_spill]]  ;;  %p615_p7 = scmp.ge.s32.totalorder %s952_s25, 2 }
  0xb9   : > { %p608_p5 = pnand %p615_p7, %p1088_p13 }
  0xbb   : > { %p609_p3 = pneg %p608_p5 }
  0xbd   : > { %s409_s3 = sand.u32 1, %s1339_s5  }
  0xbe   : > { %s410_s22 = scalar_lea.sflag [#allocation4], %s409_s3 }
  0xbf   : > { %903 = dma.done.wait (%p609_p3), %s410_s22, 128  }
  0xc0   : > { %905 = vsyncadd (%p609_p3), %s410_s22, 4294967168  ;;  %s419_s15 = scalar_lea.sflag [#allocation10], %s409_s3 }
  0xc1   : > { %907 = dma.done.wait (%p609_p3), %s419_s15, 64  }
  0xc2   : > { %909 = vsyncadd (%p609_p3), %s419_s15, 4294967232  ;;  %s27_s25 = sadd.s32 1, %s952_s25   ;;  %s1341_s10 = sld [smem:[#allocation17_spill]] }
  0xc3   : > { %p24_p2 = scmp.ge.s32.totalorder %s27_s25, 10   ;;  %s1342_s20 = sld [smem:[#allocation22_spill]] }
  0xc4   : > { %s1343_s22 = sld [smem:[#allocation18_spill]]  ;;  %s1346_s15 = smov %s916_s16 }
  0xc5   : > { %s1344_s12 = sld [smem:[#allocation19_spill]]  ;;  %s1347_s16 = smov %s920_s17 }
  0xc6   : > { %s1345_s24 = sld [smem:[#allocation20_spill]]  ;;  %s1348_s17 = smov %s1150_s1 }
  0xc7   : > { %s1349_s18 = smov %s928_s19  ;;  %s1351_s21 = smov %s944_s23 }
  0xc8   : > { %s1350_s19 = smov %s1341_s10  ;;  %26 = sbr.rel (!%p24_p2) target bundleno = 17 (0x11), region = 118 }
  0xcb   : > { %s1352_s23 = smov %s1344_s12 }
  0xcd   :  { %424 = vsyncpa [#allocation3], 1 }
  0xce   :  { %426 = vsyncpa [#allocation3 + $0x1], 1 }
  0xcf   :  { %427 = vsyncpa [#allocation6], 1 }
  0xd0   :  { %429 = vsyncpa [#allocation6 + $0x1], 1 }
  0xd1   :  { %430 = vsyncpa [#allocation4], 1 }
  0xd2   :  { %432 = vsyncpa [#allocation4 + $0x1], 1 }
  0xd3   :  { %433 = vsyncpa [#allocation10], 1 }
  0xd4   :  { %435 = vsyncpa [#allocation10 + $0x1], 1 }

</bundles_post_ra>
